<compile_context>
chip_gen: v7x
topology: tpu7x:2x2x1
jax: 0.10.0
libtpu: 0.0.40
codegen_flags: <defaults>
</compile_context>

<pallas_src>
import jax
import jax.numpy as jnp
from jax.experimental import pallas as pl
from jax.experimental.pallas import tpu as pltpu

LANE = 128       # lane-dense padded output width
TB_MAX = 4096    # batch tile rows (sized for v7x 64 MiB VMEM w/ double buffers)


def facecnn_kernel(x_ref, w1_ref, b1_ref, w2_ref, b2_ref, o_ref):
    # fc1: [TB,128]bf16 @ [128,64]bf16 -> f32 accumulator (MXU)
    h = jnp.dot(x_ref[...], w1_ref[...], preferred_element_type=jnp.float32)
    h = h + b1_ref[...]                 # bias in f32 (VPU)
    h = jnp.maximum(h, 0.0)             # ReLU in f32 (VPU)
    # fc2: cast activations to bf16 for the MXU, accumulate in f32.
    # Output is lane-dense [TB,128]; columns 2..127 of w2/b2 are zero padding.
    y = jnp.dot(h.astype(w2_ref.dtype), w2_ref[...],
                preferred_element_type=jnp.float32)
    y = y + b2_ref[...]
    o_ref[...] = y.astype(o_ref.dtype)  # unmasked, lane-dense store


def facecnn_forward(x, w1, b1, w2, b2, *, tb_max=TB_MAX):
    """x: [B,128] f32. w1: [128,64], b1: [1,64], w2: [64,2], b2: [1,2]."""
    B, F_in = x.shape
    H = w1.shape[1]      # 64
    N = w2.shape[1]      # 2

    # ---- host-side prep: dtypes + lane-dense padding of fc2 ----
    x_bf = x.astype(jnp.bfloat16)
    w1_bf = w1.astype(jnp.bfloat16)
    b1_f32 = b1.reshape(1, H).astype(jnp.float32)
    w2_pad = jnp.zeros((H, LANE), jnp.bfloat16).at[:, :N].set(
        w2.astype(jnp.bfloat16))
    b2_pad = jnp.zeros((1, LANE), jnp.float32).at[:, :N].set(
        b2.reshape(1, N).astype(jnp.float32))

    # ---- batch tiling (pad B up to a multiple of the tile) ----
    if B <= tb_max:
        tb = max(8, ((B + 7) // 8) * 8)     # single tile, sublane-aligned
    else:
        tb = tb_max
    n_tiles = pl.cdiv(B, tb)
    B_pad = n_tiles * tb
    if B_pad != B:
        x_bf = jnp.pad(x_bf, ((0, B_pad - B), (0, 0)))

    flops = 2 * B_pad * F_in * H + 2 * B_pad * H * LANE
    bytes_accessed = (x_bf.size * 2 + w1_bf.size * 2 + b1_f32.size * 4
                      + w2_pad.size * 2 + b2_pad.size * 4
                      + B_pad * LANE * 4)

    out_pad = pl.pallas_call(
        facecnn_kernel,
        out_shape=jax.ShapeDtypeStruct((B_pad, LANE), jnp.float32),
        grid_spec=pltpu.PrefetchScalarGridSpec(
            num_scalar_prefetch=0,
            grid=(n_tiles,),
            in_specs=[
                # x: tiled over batch -> double-buffered DMA overlaps compute
                pl.BlockSpec((tb, F_in), lambda i: (i, 0)),
                # weights / biases: constant block index -> resident, no re-DMA
                pl.BlockSpec((F_in, H), lambda i: (0, 0)),
                pl.BlockSpec((1, H), lambda i: (0, 0)),
                pl.BlockSpec((H, LANE), lambda i: (0, 0)),
                pl.BlockSpec((1, LANE), lambda i: (0, 0)),
            ],
            out_specs=pl.BlockSpec((tb, LANE), lambda i: (i, 0)),
        ),
        compiler_params=pltpu.CompilerParams(
            dimension_semantics=("parallel",)),
        cost_estimate=pl.CostEstimate(
            flops=flops, transcendentals=0, bytes_accessed=bytes_accessed),
    )(x_bf, w1_bf, b1_f32, w2_pad, b2_pad)

    # drop batch padding and the zero-padded output lanes
    return out_pad[:B, :N]


def init_params(key):
    # Deterministic init mimicking PyTorch's default Linear init
    # (uniform in +/- 1/sqrt(fan_in)). Weights stored [in, out].
    k1, k2, k3, k4 = jax.random.split(key, 4)
    bound1 = 1.0 / jnp.sqrt(128.0)
    w1 = jax.random.uniform(k1, (128, 64), jnp.float32, -bound1, bound1)
    b1 = jax.random.uniform(k2, (1, 64), jnp.float32, -bound1, bound1)
    bound2 = 1.0 / jnp.sqrt(64.0)
    w2 = jax.random.uniform(k3, (64, 2), jnp.float32, -bound2, bound2)
    b2 = jax.random.uniform(k4, (1, 2), jnp.float32, -bound2, bound2)
    return w1, b1, w2, b2


def reference_forward(x, w1, b1, w2, b2):
    # Same bf16-rounded operands as the kernel, f32 accumulation.
    xb = x.astype(jnp.bfloat16).astype(jnp.float32)
    w1b = w1.astype(jnp.bfloat16).astype(jnp.float32)
    w2b = w2.astype(jnp.bfloat16).astype(jnp.float32)
    h = jnp.maximum(xb @ w1b + b1, 0.0)
    h = h.astype(jnp.bfloat16).astype(jnp.float32)
    return h @ w2b + b2


if __name__ == "__main__":
    key = jax.random.PRNGKey(0)
    kx, kp = jax.random.split(key)
    B = 8
    x = jax.random.normal(kx, (B, 128), dtype=jnp.float32)
    w1, b1, w2, b2 = init_params(kp)

    out = facecnn_forward(x, w1, b1, w2, b2)
    out = jax.block_until_ready(out)

    ref = reference_forward(x, w1, b1, w2, b2)
    assert out.shape == (B, 2), out.shape
    assert jnp.allclose(out, ref, atol=2e-3, rtol=2e-3), "mismatch vs reference"

    print("KERNEL_OK")
</pallas_src>

<mosaic_0001>
module attributes {stable_mosaic.version = 11 : i64} {
  func.func @facecnn_kernel(%arg0: i32, %arg1: memref<8x128xbf16, #tpu.memory_space<vmem>>, %arg2: memref<128x64xbf16, #tpu.memory_space<vmem>>, %arg3: memref<1x64xf32, #tpu.memory_space<vmem>>, %arg4: memref<64x128xbf16, #tpu.memory_space<vmem>>, %arg5: memref<1x128xf32, #tpu.memory_space<vmem>>, %arg6: memref<8x128xf32, #tpu.memory_space<vmem>>) attributes {dimension_semantics = [#tpu.dimension_semantics<parallel>], iteration_bounds = array<i64: 1>, scalar_prefetch = 0 : i64, scratch_operands = 0 : i64, tpu.core_type = #tpu.core_type<tc>, window_params = [{transform_indices = @transform_0, window_bounds = array<i64: 8, 128>}, {pipeline_mode = #tpu.pipeline_mode<synchronous>, transform_indices = @transform_1, window_bounds = array<i64: 128, 64>}, {pipeline_mode = #tpu.pipeline_mode<synchronous>, transform_indices = @transform_2, window_bounds = array<i64: 1, 64>}, {pipeline_mode = #tpu.pipeline_mode<synchronous>, transform_indices = @transform_3, window_bounds = array<i64: 64, 128>}, {pipeline_mode = #tpu.pipeline_mode<synchronous>, transform_indices = @transform_4, window_bounds = array<i64: 1, 128>}, {transform_indices = @transform_5, window_bounds = array<i64: 8, 128>}]} {
    %c0 = arith.constant 0 : index
    %c0_0 = arith.constant 0 : index
    %0 = vector.load %arg1[%c0, %c0_0] : memref<8x128xbf16, #tpu.memory_space<vmem>>, vector<8x128xbf16>
    %c0_1 = arith.constant 0 : index
    %c0_2 = arith.constant 0 : index
    %1 = vector.load %arg2[%c0_1, %c0_2] : memref<128x64xbf16, #tpu.memory_space<vmem>>, vector<128x64xbf16>
    %cst = arith.constant dense<0.000000e+00> : vector<8x64xf32>
    %2 = tpu.matmul %0, %1, %cst {dimension_numbers = #tpu.dot_dimension_numbers<[1], [0], [0], [1], [0, 0, 1, 1], [], []>} : vector<8x128xbf16>, vector<128x64xbf16>, vector<8x64xf32> -> vector<8x64xf32>
    %c0_3 = arith.constant 0 : index
    %c0_4 = arith.constant 0 : index
    %3 = vector.load %arg3[%c0_3, %c0_4] : memref<1x64xf32, #tpu.memory_space<vmem>>, vector<1x64xf32>
    %4 = vector.broadcast %3 : vector<1x64xf32> to vector<8x64xf32>
    %5 = arith.addf %2, %4 : vector<8x64xf32>
    %cst_5 = arith.constant 0.000000e+00 : f32
    %6 = vector.broadcast %cst_5 : f32 to vector<8x64xf32>
    %7 = arith.maximumf %5, %6 : vector<8x64xf32>
    %8 = arith.truncf %7 : vector<8x64xf32> to vector<8x64xbf16>
    %c0_6 = arith.constant 0 : index
    %c0_7 = arith.constant 0 : index
    %9 = vector.load %arg4[%c0_6, %c0_7] : memref<64x128xbf16, #tpu.memory_space<vmem>>, vector<64x128xbf16>
    %cst_8 = arith.constant dense<0.000000e+00> : vector<8x128xf32>
    %10 = tpu.matmul %8, %9, %cst_8 {dimension_numbers = #tpu.dot_dimension_numbers<[1], [0], [0], [1], [0, 0, 1, 1], [], []>} : vector<8x64xbf16>, vector<64x128xbf16>, vector<8x128xf32> -> vector<8x128xf32>
    %c0_9 = arith.constant 0 : index
    %c0_10 = arith.constant 0 : index
    %11 = vector.load %arg5[%c0_9, %c0_10] : memref<1x128xf32, #tpu.memory_space<vmem>>, vector<1x128xf32>
    %12 = vector.broadcast %11 : vector<1x128xf32> to vector<8x128xf32>
    %13 = arith.addf %10, %12 : vector<8x128xf32>
    %c0_11 = arith.constant 0 : index
    %c0_12 = arith.constant 0 : index
    %14 = vector.load %arg6[%c0_11, %c0_12] : memref<8x128xf32, #tpu.memory_space<vmem>>, vector<8x128xf32>
    tpu.vector_store %arg6[%c0_11, %c0_12], %13 {strides = array<i32>} : memref<8x128xf32, #tpu.memory_space<vmem>>, vector<8x128xf32>,
    return
  }
  func.func @transform_0(%arg0: i32) -> (i32, i32) {
    %c0_i32 = arith.constant 0 : i32
    %c0_i32_0 = arith.constant 0 : i32
    return %arg0, %c0_i32 : i32, i32
  }
  func.func @transform_1(%arg0: i32) -> (i32, i32) {
    %c0_i32 = arith.constant 0 : i32
    %c0_i32_0 = arith.constant 0 : i32
    %c0_i32_1 = arith.constant 0 : i32
    return %c0_i32, %c0_i32_0 : i32, i32
  }
  func.func @transform_2(%arg0: i32) -> (i32, i32) {
    %c0_i32 = arith.constant 0 : i32
    %c0_i32_0 = arith.constant 0 : i32
    %c0_i32_1 = arith.constant 0 : i32
    return %c0_i32, %c0_i32_0 : i32, i32
  }
  func.func @transform_3(%arg0: i32) -> (i32, i32) {
    %c0_i32 = arith.constant 0 : i32
    %c0_i32_0 = arith.constant 0 : i32
    %c0_i32_1 = arith.constant 0 : i32
    return %c0_i32, %c0_i32_0 : i32, i32
  }
  func.func @transform_4(%arg0: i32) -> (i32, i32) {
    %c0_i32 = arith.constant 0 : i32
    %c0_i32_0 = arith.constant 0 : i32
    %c0_i32_1 = arith.constant 0 : i32
    return %c0_i32, %c0_i32_0 : i32, i32
  }
  func.func @transform_5(%arg0: i32) -> (i32, i32) {
    %c0_i32 = arith.constant 0 : i32
    %c0_i32_0 = arith.constant 0 : i32
    return %arg0, %c0_i32 : i32, i32
  }
}

</mosaic_0001>

<bundles_post_ra>
// kernel: tpu_custom_call.1
= control target key start
LH: loop header
LB: loop body
LE: loop exit
PB: predicated region body
PF: predicated region fallthrough
CT: control target
= control target key end

     0   :  { %v334_v1 = vmov 0.0   ;;  %vm335_vm0 = vmmov 0   ;;  %s424_s0 = inlined_call_operand.vmem [shape: bf16[8,128], index: 0, kind: input, shape index: {}]   ;;  %s425_s1 = inlined_call_operand.vmem [shape: bf16[128,64], index: 1, kind: input, shape index: {}]   ;;  %s426_s2 = inlined_call_operand.vmem [shape: f32[1,64], index: 2, kind: input, shape index: {}]   ;;  %s427_s3 = inlined_call_operand.vmem [shape: bf16[64,128], index: 3, kind: input, shape index: {}]   ;;  %s428_s4 = inlined_call_operand.vmem [shape: f32[1,128], index: 4, kind: input, shape index: {}]   ;;  %s429_s5 = inlined_call_operand.hbm [shape: f32[8,128], index: 5, kind: output, shape index: {}]  }
   0x1   :  { %v298_v0 = vld [vmem:[%s425_s1] sm:$0xff]   ;;  %263 = vmatprep.subr.bf16.mxu0 %v334_v1  ;;  %283 = vmatprep.subr.bf16.mxu1 %v334_v1  ;;  %v299_v2 = vld [vmem:[%s425_s1 + $0x8] sm:$0xff]   ;;  %v300_v3 = vld [vmem:[%s425_s1 + $0x10] sm:$0xff]  }
   0x2   :  { %264 = vmatpush3.bf16.msra.mxu0 %v298_v0  ;;  %279 = vmatprep.mubr.msk.bf16.mxu0 %vm335_vm0, %v334_v1  ;;  %v306_v4 = vld [vmem:[%s427_s3] sm:$0xff]   ;;  %v301_v5 = vld [vmem:[%s425_s1 + $0x18] sm:$0xff]   ;;  %v307_v6 = vld [vmem:[%s427_s3 + $0x8] sm:$0xff]  }
   0x3   :  { %265 = vmatprep.subr.bf16.mxu0 %v334_v1  ;;  %291 = vmatprep.mubr.msk.bf16.mxu1 %vm335_vm0, %v334_v1 }
   0x4   :  { %284 = vmatpush3.bf16.msra.mxu1 %v306_v4 }
   0x5   :  { %285 = vmatprep.subr.bf16.mxu1 %v334_v1 }
   0x6   :  { %266 = vmatpush3.bf16.msra.mxu0 %v299_v2 }
   0x7   :  { %267 = vmatprep.subr.bf16.mxu0 %v334_v1 }
   0xa   :  { %268 = vmatpush3.bf16.msra.mxu0 %v300_v3 }
   0xb   :  { %269 = vmatprep.subr.bf16.mxu0 %v334_v1 }
   0xc   :  { %10 = vsyncpa [#allocation3], 0  ;;  %v302_v7 = vld [vmem:[%s425_s1 + $0x20] sm:$0xff]   ;;  %286 = vmatpush3.bf16.msra.mxu1 %v307_v6  ;;  %v303_v8 = vld [vmem:[%s425_s1 + $0x28] sm:$0xff]   ;;  %vm175_vm1 = vcmask 523264   ;;  %s336_s21 = smov [#allocation2]  }
   0xd   :  { %287 = vmatprep.subr.bf16.mxu1 %v334_v1  ;;  %v304_v9 = vld [vmem:[%s425_s1 + $0x30] sm:$0xff]   ;;  %v305_v10 = vld [vmem:[%s425_s1 + $0x38] sm:$0xff]   ;;  %v22_v11 = vld [vmem:[%s424_s0] sm:$0xf] }
   0xe   :  { %270 = vmatpush3.bf16.msra.mxu0 %v301_v5  ;;  %v308_v12 = vld [vmem:[%s427_s3 + $0x10] sm:$0xff]   ;;  %v309_v13 = vld [vmem:[%s427_s3 + $0x18] sm:$0xff]   ;;  %v234_v14 = vld [vmem:[%s426_s2] ss:$0 sm:$0xff]  ;;  %s226_s3 = sshll.u32 %s336_s21, 4  ;;  %s227_s3 = int_to_ptr.vmem [resolvable:$true] %s226_s3 }
   0xf   :  { %271 = vmatprep.subr.bf16.mxu0 %v334_v1  ;;  %v243_v22 = vld [vmem:[%s428_s4] ss:$0 sm:$0xff]  ;;  %s310_s2 = scalar_lea.vmem %s227_s3, 128  ;;  %p315_p1 = scmp.lt.s32.totalorder %s227_s3, %s227_s3 }
  0x10   :  { %288 = vmatpush3.bf16.msra.mxu1 %v308_v12  ;;  %p311_p0 = scmp.ne.s32.totalorder %s227_s3, %s310_s2  ;;  %p316_p2 = scmp.lt.s32.totalorder %s310_s2, %s310_s2 }
  0x11   :  { %289 = vmatprep.subr.bf16.mxu1 %v334_v1 }
  0x12   :  { %272 = vmatpush3.bf16.msra.mxu0 %v302_v7  ;;  %p317_p3 = por %p316_p2, %p315_p1 }
  0x13   :  { %273 = vmatprep.subr.bf16.mxu0 %v334_v1 }
  0x14   :  { %290 = vmatpush3.bf16.msra.mxu1 %v309_v13  ;;  %p318_p4 = pnand %p317_p3, %p311_p0 }
  0x16   :  { %274 = vmatpush3.bf16.msra.mxu0 %v303_v8 }
  0x17   :  { %275 = vmatprep.subr.bf16.mxu0 %v334_v1 }
  0x1a   :  { %276 = vmatpush3.bf16.msra.mxu0 %v304_v9 }
  0x1b   :  { %277 = vmatprep.subr.bf16.mxu0 %v334_v1 }
  0x1e   :  { %278 = vmatpush3.bf16.msra.mxu0 %v305_v10 }
  0x21   :  { %280 = vmatmul.mubr.bf16.vlgmr.msra.gmra.mrb[0].mxu0 %v22_v11 }
  0xf4   :  { %v128_v15 = vpop.f32.mrb[0].mxu0 }
  0xf5   :  { %v129_v16 = vadd.f32 %v234_v14, %v128_v15  ;;  %v281_v17 = vpop.f32.mrb[1].mxu0 }
  0xf6   :  { %v131_v18 = vpop.f32.mrb[2].mxu0 }
  0xf7   :  { %v134_v19 = vmax.f32 %v129_v16, 0.0  ;;  %v282_v20 = vpop.f32.mrb[3].mxu0 }
  0xf9   :  { %v135_v21 = vpack.c.bf16 %v134_v19, %v134_v19 }
  0xfb   :  { %292 = vmatmul.mubr.msk.bf16.vlgmr.msra.gmra.mrb[0].mxu1 %vm175_vm1, %v135_v21 }
 0x1ce   :  { %v213_v23 = vpop.f32.mrb[0].mxu1 }
 0x1cf   :  { %v214_v24 = vadd.f32 %v243_v22, %v213_v23  ;;  %v293_v25 = vpop.f32.mrb[1].mxu1 }
 0x1d0   :  { %v216_v26 = vpop.f32.mrb[2].mxu1 }
 0x1d1   :  { %219 = vst [vmem:[#allocation2] sm:$0xff] %v214_v24  ;;  %v294_v27 = vpop.f32.mrb[3].mxu1 }
 0x1d2   :  { %321 = shalt.err (!%p318_p4)
}
 0x1d3   :  { %s322_s4 = scalar_lea.hbm %s429_s5, 128 }
 0x1d4   :  { %p323_p5 = scmp.ne.s32.totalorder %s429_s5, %s322_s4  ;;  %p326_p6 = scmp.lt.u32.totalorder %s322_s4, %s429_s5 }
 0x1d6   :  { %p328_p7 = pnand %p326_p6, %p323_p5 }
 0x1d8   :  { %331 = shalt.err (!%p328_p7)
}
 0x1d9   :  { %229 = dma.vmem_to_hbm [thread:$0]  %s227_s3, 128, %s429_s5, [#allocation3]  }
 0x1da   :  { %332 = dma.done.wait [#allocation3], 128  }
 0x1db   :  { %333 = vsyncadd [#allocation3], 4294967168 }
 0x1dc   :  { %233 = vsyncpa [#allocation3], 1 }

</bundles_post_ra>
